<compile_context>
chip_gen: v7x
topology: tpu7x:2x2x1
jax: 0.10.0
libtpu: 0.0.40
codegen_flags: <defaults>
</compile_context>

<pallas_src>
import jax
import jax.numpy as jnp
from jax.experimental import pallas as pl
from jax.experimental.pallas import tpu as pltpu


def _fixonset_kernel(img_ref, fix_ref, lens_ref,
                     w_map_ref, b_map_ref,
                     w_fix_ref, b_fix_T_ref,
                     w_top_ref, w_bot_ref, b_single_ref,
                     out_ref):
    # image path: bf16 matmul, f32 accumulate, f32 bias + tanh.
    image_prefix = jnp.tanh(
        jnp.dot(img_ref[...], w_map_ref[...],
                preferred_element_type=jnp.float32)
        + b_map_ref[...])                                        # (TB, H) f32

    # fix path: sum over time first (f32, sublane reduce), then ONE matmul.
    # sum_t(fix_t @ W + b) == (sum_t fix_t) @ W + T*b  (T*b precomputed host-side)
    fix_sum = jnp.sum(fix_ref[...].astype(jnp.float32), axis=1)  # (TB, fix_dim)
    fix_prefix_sum = (
        jnp.dot(fix_sum.astype(w_fix_ref.dtype), w_fix_ref[...],
                preferred_element_type=jnp.float32)
        + b_fix_T_ref[...])                                      # (TB, H) f32

    inv_len = pl.reciprocal(lens_ref[...], approx=True)          # EUP, ~free
    fix_prefix_avg = jnp.tanh(fix_prefix_sum * inv_len)          # (TB, H)

    # final projection: split (2H,1) weight -> avoid concat + width-1 matmul.
    # logits = sum_h(image_prefix*w_top + fix_avg*w_bot) + b  (VPU + lane reduce)
    logits = (jnp.sum(image_prefix * w_top_ref[...]
                      + fix_prefix_avg * w_bot_ref[...],
                      axis=-1, keepdims=True)
              + b_single_ref[...])                               # (TB, 1)
    out_ref[...] = jnp.maximum(logits, 0.0)                      # ReLU


def init_params(key, img_dim, hidden_dim, fix_dim):
    """Deterministic init mirroring init_weights(): weights ~ U(-0.1, 0.1), bias = 0."""
    k1, k2, k3 = jax.random.split(key, 3)
    return {
        "w_map": jax.random.uniform(k1, (img_dim, hidden_dim), jnp.float32, -0.1, 0.1),
        "b_map": jnp.zeros((hidden_dim,), jnp.float32),
        "w_fix": jax.random.uniform(k2, (fix_dim, hidden_dim), jnp.float32, -0.1, 0.1),
        "b_fix": jnp.zeros((hidden_dim,), jnp.float32),
        "w_single": jax.random.uniform(k3, (2 * hidden_dim, 1), jnp.float32, -0.1, 0.1),
        "b_single": jnp.zeros((1,), jnp.float32),
    }


def custom_clip_fixonset_forward(attention_mask, img_vectors, fix_vectors,
                                 scanpath_lens, params, *, block_b=128):
    del attention_mask  # unused, same as the PyTorch forward
    B, img_dim = img_vectors.shape
    _, T, fix_dim = fix_vectors.shape
    H = params["w_map"].shape[1]

    # Batch tile: whole batch if small, else 128-row tiles (fills MXU M dim,
    # sublane-aligned). Partial trailing blocks are handled by Pallas.
    block_b = B if B <= block_b else block_b
    grid = (pl.cdiv(B, block_b),)

    # bf16 matmul operands (f32 accumulation in-kernel).
    img_bf = img_vectors.astype(jnp.bfloat16)
    fix_bf = fix_vectors.astype(jnp.bfloat16)
    w_map_bf = params["w_map"].astype(jnp.bfloat16)
    w_fix_bf = params["w_fix"].astype(jnp.bfloat16)

    lens2d = scanpath_lens.astype(jnp.float32).reshape(B, 1)
    b_map2d = params["b_map"].astype(jnp.float32).reshape(1, H)
    # sum-over-T happens before the fix matmul => bias is added T times.
    b_fix_T = (jnp.float32(T) * params["b_fix"].astype(jnp.float32)).reshape(1, H)
    # split final projection into its two H-row halves (host-side, once).
    w_single = params["w_single"].astype(jnp.float32)
    w_top = w_single[:H, 0].reshape(1, H)
    w_bot = w_single[H:, 0].reshape(1, H)
    b_single2d = params["b_single"].astype(jnp.float32).reshape(1, 1)

    def resident(shape):  # weight/bias blocks: constant index -> stays in VMEM
        return pl.BlockSpec(shape, lambda i: (0,) * len(shape))

    logits = pl.pallas_call(
        _fixonset_kernel,
        out_shape=jax.ShapeDtypeStruct((B, 1), jnp.float32),
        grid=grid,
        in_specs=[
            pl.BlockSpec((block_b, img_dim), lambda i: (i, 0)),       # img
            pl.BlockSpec((block_b, T, fix_dim), lambda i: (i, 0, 0)), # fix
            pl.BlockSpec((block_b, 1), lambda i: (i, 0)),             # lens
            resident((img_dim, H)),   # w_map
            resident((1, H)),         # b_map
            resident((fix_dim, H)),   # w_fix
            resident((1, H)),         # T * b_fix
            resident((1, H)),         # w_single top half
            resident((1, H)),         # w_single bottom half
            resident((1, 1)),         # b_single
        ],
        # TODO(synk): output is genuinely width-1; lane-dense padding of the
        # store only pays off at large B (negligible here).
        out_specs=pl.BlockSpec((block_b, 1), lambda i: (i, 0)),
        compiler_params=pltpu.CompilerParams(
            dimension_semantics=("parallel",)),   # shards batch over v7x's 2 TCs
    )(img_bf, fix_bf, lens2d,
      w_map_bf, b_map2d, w_fix_bf, b_fix_T,
      w_top, w_bot, b_single2d)

    return {"logits": logits}


def _reference_forward(attention_mask, img_vectors, fix_vectors,
                       scanpath_lens, params):
    """Pure-JAX f32 reference for correctness checking."""
    del attention_mask
    image_prefix = jnp.tanh(img_vectors @ params["w_map"] + params["b_map"])
    fix_prefix = fix_vectors @ params["w_fix"] + params["b_fix"]   # (B, T, H)
    fix_avg = jnp.tanh(jnp.sum(fix_prefix, axis=1) / scanpath_lens[:, None])
    full = jnp.concatenate([image_prefix, fix_avg], axis=-1)
    logits = full @ params["w_single"] + params["b_single"]
    return jax.nn.relu(logits)


if __name__ == "__main__":
    # Small shapes consistent with the module's forward:
    B, T = 2, 8                 # batch, scanpath length (time steps)
    IMG_DIM, HIDDEN_DIM, FIX_DIM = 32, 32, 16

    key = jax.random.PRNGKey(0)
    kp, ki, kf, kl = jax.random.split(key, 4)

    params = init_params(kp, IMG_DIM, HIDDEN_DIM, FIX_DIM)

    img_vectors = jax.random.normal(ki, (B, IMG_DIM), jnp.float32)
    fix_vectors = jax.random.normal(kf, (B, T, FIX_DIM), jnp.float32)
    scanpath_lens = jax.random.randint(kl, (B,), 1, T + 1).astype(jnp.float32)
    attention_mask = jnp.ones((B, T), jnp.float32)  # unused by forward

    out = custom_clip_fixonset_forward(attention_mask, img_vectors,
                                       fix_vectors, scanpath_lens, params)
    logits = jax.block_until_ready(out["logits"])

    ref = _reference_forward(attention_mask, img_vectors, fix_vectors,
                             scanpath_lens, params)
    assert logits.shape == (B, 1)
    # bf16 matmul operands (f32 accumulate) + approx reciprocal -> loose-ish tol.
    assert jnp.allclose(logits, ref, atol=2e-2, rtol=2e-2), (logits, ref)

    print("KERNEL_OK")
</pallas_src>

<mosaic_0001>
module attributes {stable_mosaic.version = 11 : i64} {
  func.func @_fixonset_kernel(%arg0: i32, %arg1: memref<2x32xbf16, #tpu.memory_space<vmem>>, %arg2: memref<2x8x16xbf16, #tpu.memory_space<vmem>>, %arg3: memref<2x1xf32, #tpu.memory_space<vmem>>, %arg4: memref<32x32xbf16, #tpu.memory_space<vmem>>, %arg5: memref<1x32xf32, #tpu.memory_space<vmem>>, %arg6: memref<16x32xbf16, #tpu.memory_space<vmem>>, %arg7: memref<1x32xf32, #tpu.memory_space<vmem>>, %arg8: memref<1x32xf32, #tpu.memory_space<vmem>>, %arg9: memref<1x32xf32, #tpu.memory_space<vmem>>, %arg10: memref<1x1xf32, #tpu.memory_space<vmem>>, %arg11: memref<2x1xf32, #tpu.memory_space<vmem>>) attributes {dimension_semantics = [#tpu.dimension_semantics<parallel>], iteration_bounds = array<i64: 1>, scalar_prefetch = 0 : i64, scratch_operands = 0 : i64, tpu.core_type = #tpu.core_type<tc>, window_params = [{transform_indices = @transform_0, window_bounds = array<i64: 2, 32>}, {transform_indices = @transform_1, window_bounds = array<i64: 2, 8, 16>}, {transform_indices = @transform_2, window_bounds = array<i64: 2, 1>}, {pipeline_mode = #tpu.pipeline_mode<synchronous>, transform_indices = @transform_3, window_bounds = array<i64: 32, 32>}, {pipeline_mode = #tpu.pipeline_mode<synchronous>, transform_indices = @transform_4, window_bounds = array<i64: 1, 32>}, {pipeline_mode = #tpu.pipeline_mode<synchronous>, transform_indices = @transform_5, window_bounds = array<i64: 16, 32>}, {pipeline_mode = #tpu.pipeline_mode<synchronous>, transform_indices = @transform_6, window_bounds = array<i64: 1, 32>}, {pipeline_mode = #tpu.pipeline_mode<synchronous>, transform_indices = @transform_7, window_bounds = array<i64: 1, 32>}, {pipeline_mode = #tpu.pipeline_mode<synchronous>, transform_indices = @transform_8, window_bounds = array<i64: 1, 32>}, {pipeline_mode = #tpu.pipeline_mode<synchronous>, transform_indices = @transform_9, window_bounds = array<i64: 1, 1>}, {transform_indices = @transform_10, window_bounds = array<i64: 2, 1>}]} {
    %c0 = arith.constant 0 : index
    %c0_0 = arith.constant 0 : index
    %0 = vector.load %arg1[%c0, %c0_0] : memref<2x32xbf16, #tpu.memory_space<vmem>>, vector<2x32xbf16>
    %c0_1 = arith.constant 0 : index
    %c0_2 = arith.constant 0 : index
    %1 = vector.load %arg4[%c0_1, %c0_2] : memref<32x32xbf16, #tpu.memory_space<vmem>>, vector<32x32xbf16>
    %cst = arith.constant dense<0.000000e+00> : vector<2x32xf32>
    %2 = tpu.matmul %0, %1, %cst {dimension_numbers = #tpu.dot_dimension_numbers<[1], [0], [0], [1], [0, 0, 1, 1], [], []>} : vector<2x32xbf16>, vector<32x32xbf16>, vector<2x32xf32> -> vector<2x32xf32>
    %c0_3 = arith.constant 0 : index
    %c0_4 = arith.constant 0 : index
    %3 = vector.load %arg5[%c0_3, %c0_4] : memref<1x32xf32, #tpu.memory_space<vmem>>, vector<1x32xf32>
    %4 = vector.broadcast %3 : vector<1x32xf32> to vector<2x32xf32>
    %5 = arith.addf %2, %4 : vector<2x32xf32>
    %6 = math.tanh %5 : vector<2x32xf32>
    %c0_5 = arith.constant 0 : index
    %c0_6 = arith.constant 0 : index
    %c0_7 = arith.constant 0 : index
    %7 = vector.load %arg2[%c0_5, %c0_6, %c0_7] : memref<2x8x16xbf16, #tpu.memory_space<vmem>>, vector<2x8x16xbf16>
    %8 = arith.extf %7 : vector<2x8x16xbf16> to vector<2x8x16xf32>
    %cst_8 = arith.constant dense<0.000000e+00> : vector<2x16xf32>
    %9 = vector.multi_reduction <add>, %8, %cst_8 [1] : vector<2x8x16xf32> to vector<2x16xf32>
    %10 = arith.truncf %9 : vector<2x16xf32> to vector<2x16xbf16>
    %c0_9 = arith.constant 0 : index
    %c0_10 = arith.constant 0 : index
    %11 = vector.load %arg6[%c0_9, %c0_10] : memref<16x32xbf16, #tpu.memory_space<vmem>>, vector<16x32xbf16>
    %cst_11 = arith.constant dense<0.000000e+00> : vector<2x32xf32>
    %12 = tpu.matmul %10, %11, %cst_11 {dimension_numbers = #tpu.dot_dimension_numbers<[1], [0], [0], [1], [0, 0, 1, 1], [], []>} : vector<2x16xbf16>, vector<16x32xbf16>, vector<2x32xf32> -> vector<2x32xf32>
    %c0_12 = arith.constant 0 : index
    %c0_13 = arith.constant 0 : index
    %13 = vector.load %arg7[%c0_12, %c0_13] : memref<1x32xf32, #tpu.memory_space<vmem>>, vector<1x32xf32>
    %14 = vector.broadcast %13 : vector<1x32xf32> to vector<2x32xf32>
    %15 = arith.addf %12, %14 : vector<2x32xf32>
    %c0_14 = arith.constant 0 : index
    %c0_15 = arith.constant 0 : index
    %16 = vector.load %arg3[%c0_14, %c0_15] : memref<2x1xf32, #tpu.memory_space<vmem>>, vector<2x1xf32>
    %17 = tpu.reciprocal %16 {approx = true} : vector<2x1xf32> -> vector<2x1xf32>
    %18 = vector.broadcast %17 : vector<2x1xf32> to vector<2x32xf32>
    %19 = arith.mulf %15, %18 : vector<2x32xf32>
    %20 = math.tanh %19 : vector<2x32xf32>
    %c0_16 = arith.constant 0 : index
    %c0_17 = arith.constant 0 : index
    %21 = vector.load %arg8[%c0_16, %c0_17] : memref<1x32xf32, #tpu.memory_space<vmem>>, vector<1x32xf32>
    %22 = vector.broadcast %21 : vector<1x32xf32> to vector<2x32xf32>
    %23 = arith.mulf %6, %22 : vector<2x32xf32>
    %c0_18 = arith.constant 0 : index
    %c0_19 = arith.constant 0 : index
    %24 = vector.load %arg9[%c0_18, %c0_19] : memref<1x32xf32, #tpu.memory_space<vmem>>, vector<1x32xf32>
    %25 = vector.broadcast %24 : vector<1x32xf32> to vector<2x32xf32>
    %26 = arith.mulf %20, %25 : vector<2x32xf32>
    %27 = arith.addf %23, %26 : vector<2x32xf32>
    %cst_20 = arith.constant dense<0.000000e+00> : vector<2xf32>
    %28 = vector.multi_reduction <add>, %27, %cst_20 [1] : vector<2x32xf32> to vector<2xf32>
    %29 = vector.shape_cast %28 : vector<2xf32> to vector<2x1xf32>
    %c0_21 = arith.constant 0 : index
    %c0_22 = arith.constant 0 : index
    %30 = vector.load %arg10[%c0_21, %c0_22] : memref<1x1xf32, #tpu.memory_space<vmem>>, vector<1x1xf32>
    %31 = vector.broadcast %30 : vector<1x1xf32> to vector<2x1xf32>
    %32 = arith.addf %29, %31 : vector<2x1xf32>
    %cst_23 = arith.constant 0.000000e+00 : f32
    %33 = vector.broadcast %cst_23 : f32 to vector<2x1xf32>
    %34 = arith.maximumf %32, %33 : vector<2x1xf32>
    %c0_24 = arith.constant 0 : index
    %c0_25 = arith.constant 0 : index
    %35 = vector.load %arg11[%c0_24, %c0_25] : memref<2x1xf32, #tpu.memory_space<vmem>>, vector<2x1xf32>
    tpu.vector_store %arg11[%c0_24, %c0_25], %34 {strides = array<i32>} : memref<2x1xf32, #tpu.memory_space<vmem>>, vector<2x1xf32>,
    return
  }
  func.func @transform_0(%arg0: i32) -> (i32, i32) {
    %c0_i32 = arith.constant 0 : i32
    %c0_i32_0 = arith.constant 0 : i32
    return %arg0, %c0_i32 : i32, i32
  }
  func.func @transform_1(%arg0: i32) -> (i32, i32, i32) {
    %c0_i32 = arith.constant 0 : i32
    %c0_i32_0 = arith.constant 0 : i32
    %c0_i32_1 = arith.constant 0 : i32
    return %arg0, %c0_i32, %c0_i32_0 : i32, i32, i32
  }
  func.func @transform_2(%arg0: i32) -> (i32, i32) {
    %c0_i32 = arith.constant 0 : i32
    %c0_i32_0 = arith.constant 0 : i32
    return %arg0, %c0_i32 : i32, i32
  }
  func.func @transform_3(%arg0: i32) -> (i32, i32) {
    %c0_i32 = arith.constant 0 : i32
    %c0_i32_0 = arith.constant 0 : i32
    %c0_i32_1 = arith.constant 0 : i32
    return %c0_i32, %c0_i32_0 : i32, i32
  }
  func.func @transform_4(%arg0: i32) -> (i32, i32) {
    %c0_i32 = arith.constant 0 : i32
    %c0_i32_0 = arith.constant 0 : i32
    %c0_i32_1 = arith.constant 0 : i32
    return %c0_i32, %c0_i32_0 : i32, i32
  }
  func.func @transform_5(%arg0: i32) -> (i32, i32) {
    %c0_i32 = arith.constant 0 : i32
    %c0_i32_0 = arith.constant 0 : i32
    %c0_i32_1 = arith.constant 0 : i32
    return %c0_i32, %c0_i32_0 : i32, i32
  }
  func.func @transform_6(%arg0: i32) -> (i32, i32) {
    %c0_i32 = arith.constant 0 : i32
    %c0_i32_0 = arith.constant 0 : i32
    %c0_i32_1 = arith.constant 0 : i32
    return %c0_i32, %c0_i32_0 : i32, i32
  }
  func.func @transform_7(%arg0: i32) -> (i32, i32) {
    %c0_i32 = arith.constant 0 : i32
    %c0_i32_0 = arith.constant 0 : i32
    %c0_i32_1 = arith.constant 0 : i32
    return %c0_i32, %c0_i32_0 : i32, i32
  }
  func.func @transform_8(%arg0: i32) -> (i32, i32) {
    %c0_i32 = arith.constant 0 : i32
    %c0_i32_0 = arith.constant 0 : i32
    %c0_i32_1 = arith.constant 0 : i32
    return %c0_i32, %c0_i32_0 : i32, i32
  }
  func.func @transform_9(%arg0: i32) -> (i32, i32) {
    %c0_i32 = arith.constant 0 : i32
    %c0_i32_0 = arith.constant 0 : i32
    %c0_i32_1 = arith.constant 0 : i32
    return %c0_i32, %c0_i32_0 : i32, i32
  }
  func.func @transform_10(%arg0: i32) -> (i32, i32) {
    %c0_i32 = arith.constant 0 : i32
    %c0_i32_0 = arith.constant 0 : i32
    return %arg0, %c0_i32 : i32, i32
  }
}

</mosaic_0001>

<bundles_post_ra>
// kernel: tpu_custom_call.1
= control target key start
LH: loop header
LB: loop body
LE: loop exit
PB: predicated region body
PF: predicated region fallthrough
CT: control target
= control target key end

     0   :  { %s435_s0 = inlined_call_operand.vmem [shape: bf16[2,32], index: 0, kind: input, shape index: {}]   ;;  %s436_s1 = inlined_call_operand.hbm [shape: bf16[2,8,16], index: 1, kind: input, shape index: {}]   ;;  %s437_s2 = inlined_call_operand.vmem [shape: f32[2,1], index: 2, kind: input, shape index: {}]   ;;  %s438_s3 = inlined_call_operand.vmem [shape: bf16[32,32], index: 3, kind: input, shape index: {}]   ;;  %s439_s4 = inlined_call_operand.vmem [shape: f32[1,32], index: 4, kind: input, shape index: {}]   ;;  %s440_s5 = inlined_call_operand.vmem [shape: bf16[16,32], index: 5, kind: input, shape index: {}]   ;;  %s441_s6 = inlined_call_operand.vmem [shape: f32[1,32], index: 6, kind: input, shape index: {}]   ;;  %s442_s7 = inlined_call_operand.vmem [shape: f32[1,32], index: 7, kind: input, shape index: {}]   ;;  %s443_s8 = inlined_call_operand.vmem [shape: f32[1,32], index: 8, kind: input, shape index: {}]   ;;  %s444_s9 = inlined_call_operand.<no memory space> [shape: f32[1,1], index: 9, kind: input, shape index: {}]   ;;  %s445_s10 = inlined_call_operand.vmem [shape: f32[2,1], index: 10, kind: output, shape index: {}]  }
   0x1   :  { %v15_v0 = vstv %s444_s9 }
   0x2   :  { %16 = vst [vmem:[#allocation2] sm:$0x1] %v15_v0 }
   0x3   :  { %17 = vsyncpa [#allocation4], 0  ;;  %s326_s15 = smov [#allocation3]   ;;  %s302_s19 = scalar_lea.hbm %s436_s1, 128 }
   0x4   :  { %s25_s16 = sshll.u32 %s326_s15, 4  ;;  %p303_p0 = scmp.ne.s32.totalorder %s436_s1, %s302_s19  ;;  %s26_s16 = int_to_ptr.vmem [resolvable:$true] %s25_s16 }
   0x5   :  { %p306_p1 = scmp.lt.u32.totalorder %s302_s19, %s436_s1 }
   0x7   :  { %p308_p2 = pnand %p306_p1, %p303_p0 }
   0x9   :  { %311 = shalt.err (!%p308_p2)
}
   0xa   :  { %s312_s9 = scalar_lea.vmem %s26_s16, 128  ;;  %p317_p4 = scmp.lt.s32.totalorder %s26_s16, %s26_s16 }
   0xb   :  { %p313_p3 = scmp.ne.s32.totalorder %s26_s16, %s312_s9  ;;  %p318_p5 = scmp.lt.s32.totalorder %s312_s9, %s312_s9 }
   0xd   :  { %p319_p6 = por %p318_p5, %p317_p4 }
   0xf   :  { %p320_p7 = pnand %p319_p6, %p313_p3 }
  0x11   :  { %323 = shalt.err (!%p320_p7)
}
  0x12   :  { %s327_s24 = smov 64   ;;  %s328_s25 = smov 4  }
  0x13   :  { %31 = dma.hbm_to_vmem [thread:$0]  %s436_s1, 128, %s26_s16, [#allocation4], %s327_s24, %s327_s24, %s328_s25  }
  0x14   :  { %324 = dma.done.wait [#allocation4], 128  }
  0x15   :  { %325 = vsyncadd [#allocation4], 4294967168  ;;  %v329_v1 = vmov 0.0   ;;  %vm330_vm0 = vmmov 0   ;;  %v331_v2 = vmov 0   ;;  %v293_v3 = vld [vmem:[%s438_s3] sm:$0xff]  }
  0x16   :  { %272 = vmatprep.subr.bf16.mxu0 %v329_v1  ;;  %280 = vmatprep.subr.bf16.mxu1 %v329_v1  ;;  %v294_v4 = vld [vmem:[%s438_s3 + $0x8] sm:$0xff]   ;;  %v295_v5 = vld [vmem:[%s440_s5] sm:$0xff]   ;;  %vm125_vm1 = vcmask 130048   ;;  %vm76_vm2 = vcmask 261120   ;;  %vm155_vm3 = vcmask 1041409   ;;  %vm233_vm4 = vcmask 254976  }
  0x17   :  { %276 = vmatprep.mubr.msk.bf16.mxu0 %vm330_vm0, %v329_v1  ;;  %282 = vmatprep.mubr.msk.bf16.mxu1 %vm330_vm0, %v329_v1  ;;  %v264_v6 = vld [vmem:[#allocation3] sm:$0xff]   ;;  %v52_v10 = vld [vmem:[%s435_s0] sm:$0x1]  ;;  %vm246_vm5 = vcmask 1024  }
  0x18   :  { %292 = vset.pattern.permute.xlu0 %v331_v2  ;;  %273 = vmatpush3.bf16.msra.mxu0 %v293_v3  ;;  %v207_v7 = vld [vmem:[%s437_s2] sm:$0x3]  ;;  %v265_v8 = vunpack.c.l.bf16 %v264_v6  ;;  %v266_v9 = vunpack.c.h.bf16 %v264_v6 }
  0x19   :  { %274 = vmatprep.subr.bf16.mxu0 %v329_v1  ;;  %281 = vmatpush3.bf16.msra.mxu1 %v295_v5  ;;  %296 = vrcp.f32 %v207_v7  ;;  %v253_v36 = vld [vmem:[%s439_s4] ss:$0 sm:$0xff] }
  0x1a   :  { %v126_v11 = vsel %vm125_vm1, %v265_v8, 0.0  ;;  %v133_v12 = vsel %vm125_vm1, %v266_v9, 0.0  ;;  %v257_v38 = vld [vmem:[%s441_s6] ss:$0 sm:$0xff] }
  0x1b   :  { %v127_v13 = vrot.slane %v126_v11, 4  ;;  %v134_v14 = vrot.slane %v133_v12, 4  ;;  %v260_v47 = vld [vmem:[%s442_s7] ss:$0 sm:$0xff] }
  0x1c   :  { %275 = vmatpush3.bf16.msra.mxu0 %v294_v4  ;;  %v261_v48 = vld [vmem:[%s443_s8] ss:$0 sm:$0xff] }
  0x1d   :  { %v128_v15 = vadd.f32 %v127_v13, %v126_v11  ;;  %v135_v16 = vadd.f32 %v134_v14, %v133_v12  ;;  %v262_v54 = vld [vmem:[#allocation2] ss:$0 sm:$0xff] }
  0x1f   :  { %277 = vmatmul.mubr.msk.bf16.vlgmr.msra.gmra.mrb[0].mxu0 %vm76_vm2, %v52_v10  ;;  %v129_v17 = vrot.slane %v128_v15, 2  ;;  %v136_v18 = vrot.slane %v135_v16, 2 }
  0x21   :  { %v130_v19 = vadd.f32 %v129_v17, %v128_v15  ;;  %v137_v20 = vadd.f32 %v136_v18, %v135_v16 }
  0x23   :  { %v297_v21 = vpop.eup %296  ;;  %v131_v22 = vrot.slane %v130_v19, 1  ;;  %v138_v23 = vrot.slane %v137_v20, 1 }
  0x24   :  { %211 = vperm.xlu0 %292, %v297_v21  }
  0x25   :  { %v132_v24 = vadd.f32 %v131_v22, %v130_v19  ;;  %v139_v25 = vadd.f32 %v138_v23, %v137_v20 }
  0x27   :  { %v140_v26 = vpack.c.bf16 %v132_v24, %v132_v24  ;;  %v141_v27 = vpack.c.bf16 %v139_v25, %v139_v25 }
  0x29   :  { %v153_v28 = vunpack.c.l.b16 %v140_v26  ;;  %v154_v29 = vunpack.c.l.b16 %v141_v27 }
  0x2b   :  { %v156_v30 = vsel %vm155_vm3, %v154_v29, %v153_v28 }
  0x2c   :  { %v157_v31 = vpack.c.b16 %v156_v30, %v156_v30 }
  0x2e   :  { %283 = vmatmul.mubr.msk.bf16.vlgmr.msra.gmra.mrb[0].mxu1 %vm125_vm1, %v157_v31 }
  0xa3   :  { %v212_v40 = vpop.permute.xlu0 %211 }
  0xf2   :  { %v114_v32 = vpop.f32.mrb[0].mxu0 }
  0xf3   :  { %v278_v33 = vpop.f32.mrb[1].mxu0  ;;  %v115_v37 = vadd.f32 %v253_v36, %v114_v32 }
  0xf4   :  { %v117_v34 = vpop.f32.mrb[2].mxu0 }
  0xf5   :  { %v279_v35 = vpop.f32.mrb[3].mxu0  ;;  %298 = vtanh.f32 %v115_v37 }
  0xff   :  { %v299_v46 = vpop.eup %298 }
 0x100   :  { %v223_v49 = vmul.f32 %v299_v46, %v260_v47 }
 0x101   :  { %v201_v39 = vpop.f32.mrb[0].mxu1 }
 0x102   :  { %v202_v41 = vadd.f32 %v257_v38, %v201_v39  ;;  %v284_v42 = vpop.f32.mrb[1].mxu1 }
 0x103   :  { %v204_v43 = vpop.f32.mrb[2].mxu1 }
 0x104   :  { %v214_v44 = vmul.f32 %v212_v40, %v202_v41  ;;  %v285_v45 = vpop.f32.mrb[3].mxu1 }
 0x106   :  { %300 = vtanh.f32 %v214_v44 }
 0x110   :  { %v301_v50 = vpop.eup %300 }
 0x111   :  { %v231_v51 = vmul.f32 %v301_v50, %v261_v48 }
 0x113   :  { %v232_v52 = vadd.f32 %v231_v51, %v223_v49 }
 0x115   :  { %v234_v53 = vsel %vm233_vm4, %v232_v52, 0.0 }
 0x116   :  { %235 = vadd.xlane.f32.xlu0 %v234_v53 }
 0x1a3   :  { %v236_v55 = vpop.xlane.xlu0 %235 }
 0x1a4   :  { %v244_v56 = vadd.f32 %v262_v54, %v236_v55 }
 0x1a6   :  { %v245_v57 = vmax.f32 %v244_v56, 0.0 }
 0x1a8   :  { %247 = vst.msk [vmem:[%s445_s10] sm:$0x3] %vm246_vm5, %v245_v57 }
 0x1a9   :  { %252 = vsyncpa [#allocation4], 1 }

</bundles_post_ra>
